<compile_context>
chip_gen: v7x
topology: tpu7x:2x2x1
jax: 0.10.0
libtpu: 0.0.40
codegen_flags: <defaults>
</compile_context>

<pallas_src>
import math
import numpy as np
import jax
import jax.numpy as jnp
from jax.experimental import pallas as pl
from jax.experimental.pallas import tpu as pltpu

# ---- module hyper-params (small, consistent with the module structure) ----
NSAMPLES = 25
D_IN = NSAMPLES + 103          # 128: input feature width of Encoder.lin (lane dense)
D_MODEL = 32
D_FF = 64
D_K = 8
N_HEADS = 4                    # nheads * d_k == d_model
NLAYERS = 2
EPS = 1e-6
BATCH = 8
LANE = 128                     # lane-dense compute width

# packed-operand layout
NW = 1 + 3 * NLAYERS           # wlin + per-layer (Wv@Wfc, W1, W2)
NV = 3 + 4 * NLAYERS           # blin, gf, bf + per-layer (g1, b1, g2, b2)
V_BLIN, V_GF, V_BF = 0, 1, 2


def _round_up(n, m):
    return ((n + m - 1) // m) * m


def encoder_kernel(x_ref, w_ref, v_ref, out_ref):
    f32 = jnp.float32
    bf16 = jnp.bfloat16

    lane = jax.lax.broadcasted_iota(jnp.int32, (1, LANE), 1)
    ln_mask = (lane < D_MODEL).astype(f32)        # masks padded lanes in the variance

    def vec(i):                                    # [1, LANE] f32, zero on padded lanes
        return v_ref[i]

    def layernorm(v, gamma, beta):
        # PyTorch LayerNorm in this module: unbiased std (d-1), eps added to std.
        # Activations are zero on padded lanes, so the plain sum is the real-lane sum.
        mean = jnp.sum(v, axis=-1, keepdims=True) * (1.0 / D_MODEL)
        c = v - mean
        var = jnp.sum(c * c * ln_mask, axis=-1, keepdims=True) * (1.0 / (D_MODEL - 1))
        inv = pl.reciprocal(jnp.sqrt(var) + EPS, approx=True)
        return gamma * c * inv + beta              # gamma/beta are zero on padded lanes

    def mm(a, b):                                  # bf16 MXU matmul, f32 accumulation
        return jnp.dot(a.astype(bf16), b, preferred_element_type=f32)

    # ---------------- Encoder.lin ----------------
    h = mm(x_ref[...], w_ref[0]) + vec(V_BLIN)     # [bm,128], real data in lanes 0..31

    for l in range(NLAYERS):
        wb = 1 + 3 * l
        vb = 3 + 4 * l
        # -------- MultiHeadAttention --------
        # Softmax over the singleton key axis is identically 1.0, so context == V
        # and the whole block collapses to xn @ (Wv @ Wfc) (folded at pack time).
        xn = layernorm(h, vec(vb + 0), vec(vb + 1))
        y = h + mm(xn, w_ref[wb + 0])              # residual
        # -------- PoswiseFeedForwardNet --------
        yn = layernorm(y, vec(vb + 2), vec(vb + 3))
        h1 = jnp.maximum(mm(yn, w_ref[wb + 1]), 0.0)
        h = y + mm(h1, w_ref[wb + 2])              # residual

    # ---------------- Encoder.norm ----------------
    out_ref[...] = layernorm(h, vec(V_GF), vec(V_BF))


def encoder_forward(x, packed, *, bm=None):
    B = x.shape[0]
    if bm is None:
        r = _round_up(B, 8)
        # Large blocks amortize the ~0.35us/step pipeline overhead; keep >=2 grid
        # steps at large batch so both v7x TensorCores get work.  Sweepable (512-1024).
        bm = r if r <= 512 else 512
    b_pad = _round_up(B, bm)
    xb = x.astype(jnp.bfloat16)                    # halves the largest input DMA
    if b_pad != B:
        xb = jnp.pad(xb, ((0, b_pad - B), (0, 0)))
    grid = (b_pad // bm,)

    out_pad = pl.pallas_call(
        encoder_kernel,
        grid=grid,
        in_specs=[
            pl.BlockSpec((bm, D_IN), lambda i: (i, 0)),           # x (bf16)
            pl.BlockSpec((NW, LANE, LANE), lambda i: (0, 0, 0)),  # weight stack (bf16)
            pl.BlockSpec((NV, 1, LANE), lambda i: (0, 0, 0)),     # LN/bias stack (f32)
        ],
        out_specs=pl.BlockSpec((bm, LANE), lambda i: (i, 0)),
        out_shape=jax.ShapeDtypeStruct((b_pad, LANE), jnp.float32),
        compiler_params=pltpu.CompilerParams(dimension_semantics=("parallel",)),
    )(xb, packed["W"], packed["V"])

    out = out_pad[:B, :D_MODEL]
    # Attention maps over a singleton key axis are identically 1.0 (constant),
    # so they are produced in the wrapper with no HBM writeback from the kernel.
    attn = jnp.ones((B, N_HEADS, 1, 1), jnp.float32)
    attns = [attn for _ in range(NLAYERS)]
    return out, attns


# ----------------------------- parameters -----------------------------
def init_raw_params(key):
    ks = jax.random.split(key, 2 + 6 * NLAYERS)

    def lin(k, fan_in, fan_out):
        # nn.Linear weight is [out, in]; stored transposed [in, out]
        return jax.random.normal(k, (fan_in, fan_out), jnp.float32) / math.sqrt(fan_in)

    raw = {
        "w_lin": lin(ks[0], D_IN, D_MODEL),
        "b_lin": jax.random.normal(ks[1], (D_MODEL,), jnp.float32) * 0.1,
        "gf": jnp.ones((D_MODEL,), jnp.float32),
        "bf": jnp.zeros((D_MODEL,), jnp.float32),
    }
    per = {k: [] for k in ["wq", "wk", "wv", "wfc", "w1", "w2",
                           "g1", "b1", "g2", "b2"]}
    for l in range(NLAYERS):
        base = 2 + 6 * l
        per["wq"].append(lin(ks[base + 0], D_MODEL, N_HEADS * D_K))
        per["wk"].append(lin(ks[base + 1], D_MODEL, N_HEADS * D_K))
        per["wv"].append(lin(ks[base + 2], D_MODEL, N_HEADS * D_K))
        per["wfc"].append(lin(ks[base + 3], N_HEADS * D_K, D_MODEL))
        per["w1"].append(lin(ks[base + 4], D_MODEL, D_FF))
        per["w2"].append(lin(ks[base + 5], D_FF, D_MODEL))
        per["g1"].append(jnp.ones((D_MODEL,), jnp.float32))
        per["b1"].append(jnp.zeros((D_MODEL,), jnp.float32))
        per["g2"].append(jnp.ones((D_MODEL,), jnp.float32))
        per["b2"].append(jnp.zeros((D_MODEL,), jnp.float32))
    for k, v in per.items():
        raw[k] = jnp.stack(v)
    return raw


def pack_params(raw):
    # NOTE: every packed operand MUST be zero on padded lanes/rows — the in-kernel
    # LayerNorm statistics rely on it.
    def pad_w(w):                                  # [r, c] -> [LANE, LANE] f32 zeros elsewhere
        out = jnp.zeros((LANE, LANE), jnp.float32)
        return out.at[:w.shape[0], :w.shape[1]].set(w)

    def pad_v(v):                                  # [d] -> [1, LANE]
        out = jnp.zeros((1, LANE), jnp.float32)
        return out.at[0, :v.shape[-1]].set(v)

    ws = [pad_w(raw["w_lin"])]
    for l in range(NLAYERS):
        # attn == 1.0 => MHA output == xn @ (Wv @ Wfc); fold the product in f32 here.
        ws.append(pad_w(raw["wv"][l] @ raw["wfc"][l]))
        ws.append(pad_w(raw["w1"][l]))
        ws.append(pad_w(raw["w2"][l]))
    vs = [pad_v(raw["b_lin"]), pad_v(raw["gf"]), pad_v(raw["bf"])]
    for l in range(NLAYERS):
        vs += [pad_v(raw["g1"][l]), pad_v(raw["b1"][l]),
               pad_v(raw["g2"][l]), pad_v(raw["b2"][l])]

    return {
        "W": jnp.stack(ws).astype(jnp.bfloat16),   # [NW, 128, 128] bf16
        "V": jnp.stack(vs),                        # [NV, 1, 128] f32
    }


# ----------------------------- pure-JAX reference -----------------------------
def reference(x, raw):
    def ln(v, g, b):
        mean = v.mean(-1, keepdims=True)
        var = ((v - mean) ** 2).sum(-1, keepdims=True) / (v.shape[-1] - 1)
        return g * (v - mean) / (jnp.sqrt(var) + EPS) + b

    B = x.shape[0]
    h = x @ raw["w_lin"] + raw["b_lin"]
    attns = []
    for l in range(NLAYERS):
        xn = ln(h, raw["g1"][l], raw["b1"][l])
        q = (xn @ raw["wq"][l]).reshape(B, N_HEADS, D_K)
        k = (xn @ raw["wk"][l]).reshape(B, N_HEADS, D_K)
        v = (xn @ raw["wv"][l]).reshape(B, N_HEADS, D_K)
        s = (q * k).sum(-1)[..., None, None] / math.sqrt(D_K)    # [B, H, 1, 1]
        attn = jax.nn.softmax(s, axis=-1)                        # identically 1.0
        ctx = (attn[..., 0] * v).reshape(B, N_HEADS * D_K)
        y = h + ctx @ raw["wfc"][l]
        yn = ln(y, raw["g2"][l], raw["b2"][l])
        h = y + jnp.maximum(yn @ raw["w1"][l], 0.0) @ raw["w2"][l]
        attns.append(attn)
    return ln(h, raw["gf"], raw["bf"]), attns


if __name__ == "__main__":
    key = jax.random.PRNGKey(0)
    kx, kp = jax.random.split(key)
    x = jax.random.normal(kx, (BATCH, D_IN), jnp.float32)
    raw = init_raw_params(kp)
    packed = pack_params(raw)

    out, attns = encoder_forward(x, packed)
    jax.block_until_ready(out)
    jax.block_until_ready(attns)

    out_ref, attns_ref = reference(x, raw)
    np.testing.assert_allclose(np.asarray(out), np.asarray(out_ref),
                               rtol=2e-2, atol=2e-2)
    for a, a_ref in zip(attns, attns_ref):
        np.testing.assert_allclose(np.asarray(a), np.asarray(a_ref),
                                   rtol=1e-6, atol=1e-6)
    assert out.shape == (BATCH, D_MODEL)
    assert len(attns) == NLAYERS and attns[0].shape == (BATCH, N_HEADS, 1, 1)
    print("KERNEL_OK")
</pallas_src>

<mosaic_0001>
module attributes {stable_mosaic.version = 11 : i64} {
  func.func @encoder_kernel(%arg0: i32, %arg1: memref<8x128xbf16, #tpu.memory_space<vmem>>, %arg2: memref<7x128x128xbf16, #tpu.memory_space<vmem>>, %arg3: memref<11x1x128xf32, #tpu.memory_space<vmem>>, %arg4: memref<8x128xf32, #tpu.memory_space<vmem>>) attributes {dimension_semantics = [#tpu.dimension_semantics<parallel>], iteration_bounds = array<i64: 1>, scalar_prefetch = 0 : i64, scratch_operands = 0 : i64, tpu.core_type = #tpu.core_type<tc>, window_params = [{transform_indices = @transform_0, window_bounds = array<i64: 8, 128>}, {pipeline_mode = #tpu.pipeline_mode<synchronous>, transform_indices = @transform_1, window_bounds = array<i64: 7, 128, 128>}, {pipeline_mode = #tpu.pipeline_mode<synchronous>, transform_indices = @transform_2, window_bounds = array<i64: 11, 1, 128>}, {transform_indices = @transform_3, window_bounds = array<i64: 8, 128>}]} {
    %0 = tpu.iota {dimensions = array<i32: 1>} : vector<1x128xi32>
    %c32_i32 = arith.constant 32 : i32
    %1 = vector.broadcast %c32_i32 : i32 to vector<1x128xi32>
    %2 = arith.cmpi slt, %0, %1 : vector<1x128xi32>
    %3 = arith.extui %2 : vector<1x128xi1> to vector<1x128xi32>
    %4 = arith.sitofp %3 : vector<1x128xi32> to vector<1x128xf32>
    %c0 = arith.constant 0 : index
    %c0_0 = arith.constant 0 : index
    %5 = vector.load %arg1[%c0, %c0_0] : memref<8x128xbf16, #tpu.memory_space<vmem>>, vector<8x128xbf16>
    %c0_1 = arith.constant 0 : index
    %c0_2 = arith.constant 0 : index
    %c0_3 = arith.constant 0 : index
    %6 = vector.load %arg2[%c0_1, %c0_2, %c0_3] : memref<7x128x128xbf16, #tpu.memory_space<vmem>>, vector<1x128x128xbf16>
    %7 = vector.shape_cast %6 : vector<1x128x128xbf16> to vector<128x128xbf16>
    %cst = arith.constant dense<0.000000e+00> : vector<8x128xf32>
    %8 = tpu.matmul %5, %7, %cst {dimension_numbers = #tpu.dot_dimension_numbers<[1], [0], [0], [1], [0, 0, 1, 1], [], []>} : vector<8x128xbf16>, vector<128x128xbf16>, vector<8x128xf32> -> vector<8x128xf32>
    %c0_4 = arith.constant 0 : index
    %c0_5 = arith.constant 0 : index
    %c0_6 = arith.constant 0 : index
    %9 = vector.load %arg3[%c0_4, %c0_5, %c0_6] : memref<11x1x128xf32, #tpu.memory_space<vmem>>, vector<1x1x128xf32>
    %10 = vector.shape_cast %9 : vector<1x1x128xf32> to vector<1x128xf32>
    %11 = vector.broadcast %10 : vector<1x128xf32> to vector<8x128xf32>
    %12 = arith.addf %8, %11 : vector<8x128xf32>
    %c3 = arith.constant 3 : index
    %c0_7 = arith.constant 0 : index
    %c0_8 = arith.constant 0 : index
    %13 = vector.load %arg3[%c3, %c0_7, %c0_8] : memref<11x1x128xf32, #tpu.memory_space<vmem>>, vector<1x1x128xf32>
    %14 = vector.shape_cast %13 : vector<1x1x128xf32> to vector<1x128xf32>
    %c4 = arith.constant 4 : index
    %c0_9 = arith.constant 0 : index
    %c0_10 = arith.constant 0 : index
    %15 = vector.load %arg3[%c4, %c0_9, %c0_10] : memref<11x1x128xf32, #tpu.memory_space<vmem>>, vector<1x1x128xf32>
    %16 = vector.shape_cast %15 : vector<1x1x128xf32> to vector<1x128xf32>
    %cst_11 = arith.constant dense<0.000000e+00> : vector<8xf32>
    %17 = vector.multi_reduction <add>, %12, %cst_11 [1] : vector<8x128xf32> to vector<8xf32>
    %18 = vector.shape_cast %17 : vector<8xf32> to vector<8x1xf32>
    %cst_12 = arith.constant 3.125000e-02 : f32
    %19 = vector.broadcast %cst_12 : f32 to vector<8x1xf32>
    %20 = arith.mulf %18, %19 : vector<8x1xf32>
    %21 = vector.broadcast %20 : vector<8x1xf32> to vector<8x128xf32>
    %22 = arith.subf %12, %21 : vector<8x128xf32>
    %23 = arith.mulf %22, %22 : vector<8x128xf32>
    %24 = vector.broadcast %4 : vector<1x128xf32> to vector<8x128xf32>
    %25 = arith.mulf %23, %24 : vector<8x128xf32>
    %cst_13 = arith.constant dense<0.000000e+00> : vector<8xf32>
    %26 = vector.multi_reduction <add>, %25, %cst_13 [1] : vector<8x128xf32> to vector<8xf32>
    %27 = vector.shape_cast %26 : vector<8xf32> to vector<8x1xf32>
    %cst_14 = arith.constant 0.0322580636 : f32
    %28 = vector.broadcast %cst_14 : f32 to vector<8x1xf32>
    %29 = arith.mulf %27, %28 : vector<8x1xf32>
    %30 = math.sqrt %29 : vector<8x1xf32>
    %cst_15 = arith.constant 9.99999997E-7 : f32
    %31 = vector.broadcast %cst_15 : f32 to vector<8x1xf32>
    %32 = arith.addf %30, %31 : vector<8x1xf32>
    %33 = tpu.reciprocal %32 {approx = true} : vector<8x1xf32> -> vector<8x1xf32>
    %34 = vector.broadcast %14 : vector<1x128xf32> to vector<8x128xf32>
    %35 = arith.mulf %34, %22 : vector<8x128xf32>
    %36 = vector.broadcast %33 : vector<8x1xf32> to vector<8x128xf32>
    %37 = arith.mulf %35, %36 : vector<8x128xf32>
    %38 = vector.broadcast %16 : vector<1x128xf32> to vector<8x128xf32>
    %39 = arith.addf %37, %38 : vector<8x128xf32>
    %c1 = arith.constant 1 : index
    %c0_16 = arith.constant 0 : index
    %c0_17 = arith.constant 0 : index
    %40 = vector.load %arg2[%c1, %c0_16, %c0_17] : memref<7x128x128xbf16, #tpu.memory_space<vmem>>, vector<1x128x128xbf16>
    %41 = vector.shape_cast %40 : vector<1x128x128xbf16> to vector<128x128xbf16>
    %42 = arith.truncf %39 : vector<8x128xf32> to vector<8x128xbf16>
    %cst_18 = arith.constant dense<0.000000e+00> : vector<8x128xf32>
    %43 = tpu.matmul %42, %41, %cst_18 {dimension_numbers = #tpu.dot_dimension_numbers<[1], [0], [0], [1], [0, 0, 1, 1], [], []>} : vector<8x128xbf16>, vector<128x128xbf16>, vector<8x128xf32> -> vector<8x128xf32>
    %44 = arith.addf %12, %43 : vector<8x128xf32>
    %c5 = arith.constant 5 : index
    %c0_19 = arith.constant 0 : index
    %c0_20 = arith.constant 0 : index
    %45 = vector.load %arg3[%c5, %c0_19, %c0_20] : memref<11x1x128xf32, #tpu.memory_space<vmem>>, vector<1x1x128xf32>
    %46 = vector.shape_cast %45 : vector<1x1x128xf32> to vector<1x128xf32>
    %c6 = arith.constant 6 : index
    %c0_21 = arith.constant 0 : index
    %c0_22 = arith.constant 0 : index
    %47 = vector.load %arg3[%c6, %c0_21, %c0_22] : memref<11x1x128xf32, #tpu.memory_space<vmem>>, vector<1x1x128xf32>
    %48 = vector.shape_cast %47 : vector<1x1x128xf32> to vector<1x128xf32>
    %cst_23 = arith.constant dense<0.000000e+00> : vector<8xf32>
    %49 = vector.multi_reduction <add>, %44, %cst_23 [1] : vector<8x128xf32> to vector<8xf32>
    %50 = vector.shape_cast %49 : vector<8xf32> to vector<8x1xf32>
    %cst_24 = arith.constant 3.125000e-02 : f32
    %51 = vector.broadcast %cst_24 : f32 to vector<8x1xf32>
    %52 = arith.mulf %50, %51 : vector<8x1xf32>
    %53 = vector.broadcast %52 : vector<8x1xf32> to vector<8x128xf32>
    %54 = arith.subf %44, %53 : vector<8x128xf32>
    %55 = arith.mulf %54, %54 : vector<8x128xf32>
    %56 = vector.broadcast %4 : vector<1x128xf32> to vector<8x128xf32>
    %57 = arith.mulf %55, %56 : vector<8x128xf32>
    %cst_25 = arith.constant dense<0.000000e+00> : vector<8xf32>
    %58 = vector.multi_reduction <add>, %57, %cst_25 [1] : vector<8x128xf32> to vector<8xf32>
    %59 = vector.shape_cast %58 : vector<8xf32> to vector<8x1xf32>
    %cst_26 = arith.constant 0.0322580636 : f32
    %60 = vector.broadcast %cst_26 : f32 to vector<8x1xf32>
    %61 = arith.mulf %59, %60 : vector<8x1xf32>
    %62 = math.sqrt %61 : vector<8x1xf32>
    %cst_27 = arith.constant 9.99999997E-7 : f32
    %63 = vector.broadcast %cst_27 : f32 to vector<8x1xf32>
    %64 = arith.addf %62, %63 : vector<8x1xf32>
    %65 = tpu.reciprocal %64 {approx = true} : vector<8x1xf32> -> vector<8x1xf32>
    %66 = vector.broadcast %46 : vector<1x128xf32> to vector<8x128xf32>
    %67 = arith.mulf %66, %54 : vector<8x128xf32>
    %68 = vector.broadcast %65 : vector<8x1xf32> to vector<8x128xf32>
    %69 = arith.mulf %67, %68 : vector<8x128xf32>
    %70 = vector.broadcast %48 : vector<1x128xf32> to vector<8x128xf32>
    %71 = arith.addf %69, %70 : vector<8x128xf32>
    %c2 = arith.constant 2 : index
    %c0_28 = arith.constant 0 : index
    %c0_29 = arith.constant 0 : index
    %72 = vector.load %arg2[%c2, %c0_28, %c0_29] : memref<7x128x128xbf16, #tpu.memory_space<vmem>>, vector<1x128x128xbf16>
    %73 = vector.shape_cast %72 : vector<1x128x128xbf16> to vector<128x128xbf16>
    %74 = arith.truncf %71 : vector<8x128xf32> to vector<8x128xbf16>
    %cst_30 = arith.constant dense<0.000000e+00> : vector<8x128xf32>
    %75 = tpu.matmul %74, %73, %cst_30 {dimension_numbers = #tpu.dot_dimension_numbers<[1], [0], [0], [1], [0, 0, 1, 1], [], []>} : vector<8x128xbf16>, vector<128x128xbf16>, vector<8x128xf32> -> vector<8x128xf32>
    %cst_31 = arith.constant 0.000000e+00 : f32
    %76 = vector.broadcast %cst_31 : f32 to vector<8x128xf32>
    %77 = arith.maximumf %75, %76 : vector<8x128xf32>
    %c3_32 = arith.constant 3 : index
    %c0_33 = arith.constant 0 : index
    %c0_34 = arith.constant 0 : index
    %78 = vector.load %arg2[%c3_32, %c0_33, %c0_34] : memref<7x128x128xbf16, #tpu.memory_space<vmem>>, vector<1x128x128xbf16>
    %79 = vector.shape_cast %78 : vector<1x128x128xbf16> to vector<128x128xbf16>
    %80 = arith.truncf %77 : vector<8x128xf32> to vector<8x128xbf16>
    %cst_35 = arith.constant dense<0.000000e+00> : vector<8x128xf32>
    %81 = tpu.matmul %80, %79, %cst_35 {dimension_numbers = #tpu.dot_dimension_numbers<[1], [0], [0], [1], [0, 0, 1, 1], [], []>} : vector<8x128xbf16>, vector<128x128xbf16>, vector<8x128xf32> -> vector<8x128xf32>
    %82 = arith.addf %44, %81 : vector<8x128xf32>
    %c7 = arith.constant 7 : index
    %c0_36 = arith.constant 0 : index
    %c0_37 = arith.constant 0 : index
    %83 = vector.load %arg3[%c7, %c0_36, %c0_37] : memref<11x1x128xf32, #tpu.memory_space<vmem>>, vector<1x1x128xf32>
    %84 = vector.shape_cast %83 : vector<1x1x128xf32> to vector<1x128xf32>
    %c8 = arith.constant 8 : index
    %c0_38 = arith.constant 0 : index
    %c0_39 = arith.constant 0 : index
    %85 = vector.load %arg3[%c8, %c0_38, %c0_39] : memref<11x1x128xf32, #tpu.memory_space<vmem>>, vector<1x1x128xf32>
    %86 = vector.shape_cast %85 : vector<1x1x128xf32> to vector<1x128xf32>
    %cst_40 = arith.constant dense<0.000000e+00> : vector<8xf32>
    %87 = vector.multi_reduction <add>, %82, %cst_40 [1] : vector<8x128xf32> to vector<8xf32>
    %88 = vector.shape_cast %87 : vector<8xf32> to vector<8x1xf32>
    %cst_41 = arith.constant 3.125000e-02 : f32
    %89 = vector.broadcast %cst_41 : f32 to vector<8x1xf32>
    %90 = arith.mulf %88, %89 : vector<8x1xf32>
    %91 = vector.broadcast %90 : vector<8x1xf32> to vector<8x128xf32>
    %92 = arith.subf %82, %91 : vector<8x128xf32>
    %93 = arith.mulf %92, %92 : vector<8x128xf32>
    %94 = vector.broadcast %4 : vector<1x128xf32> to vector<8x128xf32>
    %95 = arith.mulf %93, %94 : vector<8x128xf32>
    %cst_42 = arith.constant dense<0.000000e+00> : vector<8xf32>
    %96 = vector.multi_reduction <add>, %95, %cst_42 [1] : vector<8x128xf32> to vector<8xf32>
    %97 = vector.shape_cast %96 : vector<8xf32> to vector<8x1xf32>
    %cst_43 = arith.constant 0.0322580636 : f32
    %98 = vector.broadcast %cst_43 : f32 to vector<8x1xf32>
    %99 = arith.mulf %97, %98 : vector<8x1xf32>
    %100 = math.sqrt %99 : vector<8x1xf32>
    %cst_44 = arith.constant 9.99999997E-7 : f32
    %101 = vector.broadcast %cst_44 : f32 to vector<8x1xf32>
    %102 = arith.addf %100, %101 : vector<8x1xf32>
    %103 = tpu.reciprocal %102 {approx = true} : vector<8x1xf32> -> vector<8x1xf32>
    %104 = vector.broadcast %84 : vector<1x128xf32> to vector<8x128xf32>
    %105 = arith.mulf %104, %92 : vector<8x128xf32>
    %106 = vector.broadcast %103 : vector<8x1xf32> to vector<8x128xf32>
    %107 = arith.mulf %105, %106 : vector<8x128xf32>
    %108 = vector.broadcast %86 : vector<1x128xf32> to vector<8x128xf32>
    %109 = arith.addf %107, %108 : vector<8x128xf32>
    %c4_45 = arith.constant 4 : index
    %c0_46 = arith.constant 0 : index
    %c0_47 = arith.constant 0 : index
    %110 = vector.load %arg2[%c4_45, %c0_46, %c0_47] : memref<7x128x128xbf16, #tpu.memory_space<vmem>>, vector<1x128x128xbf16>
    %111 = vector.shape_cast %110 : vector<1x128x128xbf16> to vector<128x128xbf16>
    %112 = arith.truncf %109 : vector<8x128xf32> to vector<8x128xbf16>
    %cst_48 = arith.constant dense<0.000000e+00> : vector<8x128xf32>
    %113 = tpu.matmul %112, %111, %cst_48 {dimension_numbers = #tpu.dot_dimension_numbers<[1], [0], [0], [1], [0, 0, 1, 1], [], []>} : vector<8x128xbf16>, vector<128x128xbf16>, vector<8x128xf32> -> vector<8x128xf32>
    %114 = arith.addf %82, %113 : vector<8x128xf32>
    %c9 = arith.constant 9 : index
    %c0_49 = arith.constant 0 : index
    %c0_50 = arith.constant 0 : index
    %115 = vector.load %arg3[%c9, %c0_49, %c0_50] : memref<11x1x128xf32, #tpu.memory_space<vmem>>, vector<1x1x128xf32>
    %116 = vector.shape_cast %115 : vector<1x1x128xf32> to vector<1x128xf32>
    %c10 = arith.constant 10 : index
    %c0_51 = arith.constant 0 : index
    %c0_52 = arith.constant 0 : index
    %117 = vector.load %arg3[%c10, %c0_51, %c0_52] : memref<11x1x128xf32, #tpu.memory_space<vmem>>, vector<1x1x128xf32>
    %118 = vector.shape_cast %117 : vector<1x1x128xf32> to vector<1x128xf32>
    %cst_53 = arith.constant dense<0.000000e+00> : vector<8xf32>
    %119 = vector.multi_reduction <add>, %114, %cst_53 [1] : vector<8x128xf32> to vector<8xf32>
    %120 = vector.shape_cast %119 : vector<8xf32> to vector<8x1xf32>
    %cst_54 = arith.constant 3.125000e-02 : f32
    %121 = vector.broadcast %cst_54 : f32 to vector<8x1xf32>
    %122 = arith.mulf %120, %121 : vector<8x1xf32>
    %123 = vector.broadcast %122 : vector<8x1xf32> to vector<8x128xf32>
    %124 = arith.subf %114, %123 : vector<8x128xf32>
    %125 = arith.mulf %124, %124 : vector<8x128xf32>
    %126 = vector.broadcast %4 : vector<1x128xf32> to vector<8x128xf32>
    %127 = arith.mulf %125, %126 : vector<8x128xf32>
    %cst_55 = arith.constant dense<0.000000e+00> : vector<8xf32>
    %128 = vector.multi_reduction <add>, %127, %cst_55 [1] : vector<8x128xf32> to vector<8xf32>
    %129 = vector.shape_cast %128 : vector<8xf32> to vector<8x1xf32>
    %cst_56 = arith.constant 0.0322580636 : f32
    %130 = vector.broadcast %cst_56 : f32 to vector<8x1xf32>
    %131 = arith.mulf %129, %130 : vector<8x1xf32>
    %132 = math.sqrt %131 : vector<8x1xf32>
    %cst_57 = arith.constant 9.99999997E-7 : f32
    %133 = vector.broadcast %cst_57 : f32 to vector<8x1xf32>
    %134 = arith.addf %132, %133 : vector<8x1xf32>
    %135 = tpu.reciprocal %134 {approx = true} : vector<8x1xf32> -> vector<8x1xf32>
    %136 = vector.broadcast %116 : vector<1x128xf32> to vector<8x128xf32>
    %137 = arith.mulf %136, %124 : vector<8x128xf32>
    %138 = vector.broadcast %135 : vector<8x1xf32> to vector<8x128xf32>
    %139 = arith.mulf %137, %138 : vector<8x128xf32>
    %140 = vector.broadcast %118 : vector<1x128xf32> to vector<8x128xf32>
    %141 = arith.addf %139, %140 : vector<8x128xf32>
    %c5_58 = arith.constant 5 : index
    %c0_59 = arith.constant 0 : index
    %c0_60 = arith.constant 0 : index
    %142 = vector.load %arg2[%c5_58, %c0_59, %c0_60] : memref<7x128x128xbf16, #tpu.memory_space<vmem>>, vector<1x128x128xbf16>
    %143 = vector.shape_cast %142 : vector<1x128x128xbf16> to vector<128x128xbf16>
    %144 = arith.truncf %141 : vector<8x128xf32> to vector<8x128xbf16>
    %cst_61 = arith.constant dense<0.000000e+00> : vector<8x128xf32>
    %145 = tpu.matmul %144, %143, %cst_61 {dimension_numbers = #tpu.dot_dimension_numbers<[1], [0], [0], [1], [0, 0, 1, 1], [], []>} : vector<8x128xbf16>, vector<128x128xbf16>, vector<8x128xf32> -> vector<8x128xf32>
    %cst_62 = arith.constant 0.000000e+00 : f32
    %146 = vector.broadcast %cst_62 : f32 to vector<8x128xf32>
    %147 = arith.maximumf %145, %146 : vector<8x128xf32>
    %c6_63 = arith.constant 6 : index
    %c0_64 = arith.constant 0 : index
    %c0_65 = arith.constant 0 : index
    %148 = vector.load %arg2[%c6_63, %c0_64, %c0_65] : memref<7x128x128xbf16, #tpu.memory_space<vmem>>, vector<1x128x128xbf16>
    %149 = vector.shape_cast %148 : vector<1x128x128xbf16> to vector<128x128xbf16>
    %150 = arith.truncf %147 : vector<8x128xf32> to vector<8x128xbf16>
    %cst_66 = arith.constant dense<0.000000e+00> : vector<8x128xf32>
    %151 = tpu.matmul %150, %149, %cst_66 {dimension_numbers = #tpu.dot_dimension_numbers<[1], [0], [0], [1], [0, 0, 1, 1], [], []>} : vector<8x128xbf16>, vector<128x128xbf16>, vector<8x128xf32> -> vector<8x128xf32>
    %152 = arith.addf %114, %151 : vector<8x128xf32>
    %c1_67 = arith.constant 1 : index
    %c0_68 = arith.constant 0 : index
    %c0_69 = arith.constant 0 : index
    %153 = vector.load %arg3[%c1_67, %c0_68, %c0_69] : memref<11x1x128xf32, #tpu.memory_space<vmem>>, vector<1x1x128xf32>
    %154 = vector.shape_cast %153 : vector<1x1x128xf32> to vector<1x128xf32>
    %c2_70 = arith.constant 2 : index
    %c0_71 = arith.constant 0 : index
    %c0_72 = arith.constant 0 : index
    %155 = vector.load %arg3[%c2_70, %c0_71, %c0_72] : memref<11x1x128xf32, #tpu.memory_space<vmem>>, vector<1x1x128xf32>
    %156 = vector.shape_cast %155 : vector<1x1x128xf32> to vector<1x128xf32>
    %cst_73 = arith.constant dense<0.000000e+00> : vector<8xf32>
    %157 = vector.multi_reduction <add>, %152, %cst_73 [1] : vector<8x128xf32> to vector<8xf32>
    %158 = vector.shape_cast %157 : vector<8xf32> to vector<8x1xf32>
    %cst_74 = arith.constant 3.125000e-02 : f32
    %159 = vector.broadcast %cst_74 : f32 to vector<8x1xf32>
    %160 = arith.mulf %158, %159 : vector<8x1xf32>
    %161 = vector.broadcast %160 : vector<8x1xf32> to vector<8x128xf32>
    %162 = arith.subf %152, %161 : vector<8x128xf32>
    %163 = arith.mulf %162, %162 : vector<8x128xf32>
    %164 = vector.broadcast %4 : vector<1x128xf32> to vector<8x128xf32>
    %165 = arith.mulf %163, %164 : vector<8x128xf32>
    %cst_75 = arith.constant dense<0.000000e+00> : vector<8xf32>
    %166 = vector.multi_reduction <add>, %165, %cst_75 [1] : vector<8x128xf32> to vector<8xf32>
    %167 = vector.shape_cast %166 : vector<8xf32> to vector<8x1xf32>
    %cst_76 = arith.constant 0.0322580636 : f32
    %168 = vector.broadcast %cst_76 : f32 to vector<8x1xf32>
    %169 = arith.mulf %167, %168 : vector<8x1xf32>
    %170 = math.sqrt %169 : vector<8x1xf32>
    %cst_77 = arith.constant 9.99999997E-7 : f32
    %171 = vector.broadcast %cst_77 : f32 to vector<8x1xf32>
    %172 = arith.addf %170, %171 : vector<8x1xf32>
    %173 = tpu.reciprocal %172 {approx = true} : vector<8x1xf32> -> vector<8x1xf32>
    %174 = vector.broadcast %154 : vector<1x128xf32> to vector<8x128xf32>
    %175 = arith.mulf %174, %162 : vector<8x128xf32>
    %176 = vector.broadcast %173 : vector<8x1xf32> to vector<8x128xf32>
    %177 = arith.mulf %175, %176 : vector<8x128xf32>
    %178 = vector.broadcast %156 : vector<1x128xf32> to vector<8x128xf32>
    %179 = arith.addf %177, %178 : vector<8x128xf32>
    %c0_78 = arith.constant 0 : index
    %c0_79 = arith.constant 0 : index
    %180 = vector.load %arg4[%c0_78, %c0_79] : memref<8x128xf32, #tpu.memory_space<vmem>>, vector<8x128xf32>
    tpu.vector_store %arg4[%c0_78, %c0_79], %179 {strides = array<i32>} : memref<8x128xf32, #tpu.memory_space<vmem>>, vector<8x128xf32>,
    return
  }
  func.func @transform_0(%arg0: i32) -> (i32, i32) {
    %c0_i32 = arith.constant 0 : i32
    %c0_i32_0 = arith.constant 0 : i32
    return %arg0, %c0_i32 : i32, i32
  }
  func.func @transform_1(%arg0: i32) -> (i32, i32, i32) {
    %c0_i32 = arith.constant 0 : i32
    %c0_i32_0 = arith.constant 0 : i32
    %c0_i32_1 = arith.constant 0 : i32
    %c0_i32_2 = arith.constant 0 : i32
    return %c0_i32, %c0_i32_0, %c0_i32_1 : i32, i32, i32
  }
  func.func @transform_2(%arg0: i32) -> (i32, i32, i32) {
    %c0_i32 = arith.constant 0 : i32
    %c0_i32_0 = arith.constant 0 : i32
    %c0_i32_1 = arith.constant 0 : i32
    %c0_i32_2 = arith.constant 0 : i32
    return %c0_i32, %c0_i32_0, %c0_i32_1 : i32, i32, i32
  }
  func.func @transform_3(%arg0: i32) -> (i32, i32) {
    %c0_i32 = arith.constant 0 : i32
    %c0_i32_0 = arith.constant 0 : i32
    return %arg0, %c0_i32 : i32, i32
  }
}

</mosaic_0001>

<bundles_post_ra>
// kernel: tpu_custom_call.1
= control target key start
LH: loop header
LB: loop body
LE: loop exit
PB: predicated region body
PF: predicated region fallthrough
CT: control target
= control target key end

     0   :  { %8 = vsyncpa [#allocation3], 0  ;;  %s1633_s0 = inlined_call_operand.hbm [shape: bf16[8,128], index: 0, kind: input, shape index: {}]   ;;  %s1634_s1 = inlined_call_operand.hbm [shape: bf16[7,128,128], index: 1, kind: input, shape index: {}]   ;;  %s1635_s2 = inlined_call_operand.hbm [shape: f32[11,1,128], index: 2, kind: input, shape index: {}]   ;;  %s1636_s3 = inlined_call_operand.hbm [shape: f32[8,128], index: 3, kind: output, shape index: {}]  }
   0x1   :  { %9 = vsyncpa [#allocation6], 0 }
   0x2   :  { %10 = vsyncpa [#allocation4], 0  ;;  %s1467_s12 = smov [#allocation5]   ;;  %s1373_s16 = scalar_lea.hbm %s1634_s1, 7168 }
   0x3   :  { %s26_s13 = sshll.u32 %s1467_s12, 4  ;;  %p1374_p0 = scmp.ne.s32.totalorder %s1634_s1, %s1373_s16  ;;  %s27_s13 = int_to_ptr.vmem [resolvable:$true] %s26_s13 }
   0x4   :  { %p1377_p1 = scmp.lt.u32.totalorder %s1373_s16, %s1634_s1 }
   0x6   :  { %p1379_p2 = pnand %p1377_p1, %p1374_p0 }
   0x8   :  { %1382 = shalt.err (!%p1379_p2)
}
   0x9   :  { %s1383_s21 = scalar_lea.vmem %s27_s13, 7168  ;;  %p1388_p4 = scmp.lt.s32.totalorder %s27_s13, %s27_s13 }
   0xa   :  { %p1384_p3 = scmp.ne.s32.totalorder %s27_s13, %s1383_s21  ;;  %p1389_p5 = scmp.lt.s32.totalorder %s1383_s21, %s1383_s21 }
   0xc   :  { %p1390_p6 = por %p1389_p5, %p1388_p4 }
   0xe   :  { %p1391_p7 = pnand %p1390_p6, %p1384_p3 }
  0x10   :  { %1394 = shalt.err (!%p1391_p7)
}
  0x11   :  { %s1468_s22 = smov 64   ;;  %s1469_s23 = smov 4  }
  0x12   :  { %32 = dma.hbm_to_vmem [thread:$0]  %s1634_s1, 7168, %s27_s13, [#allocation6], %s1468_s22, %s1468_s22, %s1469_s23  }
  0x13   :  { %s1470_s26 = smov [#allocation2]   ;;  %s1471_s28 = smov [#allocation7]  }
  0x14   :  { %s17_s27 = sshll.u32 %s1470_s26, 4  ;;  %s38_s29 = sshll.u32 %s1471_s28, 4  ;;  %s18_s27 = int_to_ptr.vmem [resolvable:$true] %s17_s27  ;;  %s39_s29 = int_to_ptr.vmem [resolvable:$true] %s38_s29 }
  0x15   :  { %s1395_s5 = scalar_lea.hbm %s1633_s0, 64 }
  0x16   :  { %p1396_p8 = scmp.ne.s32.totalorder %s1633_s0, %s1395_s5  ;;  %p1399_p9 = scmp.lt.u32.totalorder %s1395_s5, %s1633_s0 }
  0x18   :  { %p1401_p10 = pnand %p1399_p9, %p1396_p8 }
  0x1a   :  { %1404 = shalt.err (!%p1401_p10)
}
  0x1b   :  { %s1405_s1 = scalar_lea.vmem %s18_s27, 64  ;;  %p1410_p12 = scmp.lt.s32.totalorder %s18_s27, %s18_s27 }
  0x1c   :  { %p1406_p11 = scmp.ne.s32.totalorder %s18_s27, %s1405_s1  ;;  %p1411_p13 = scmp.lt.s32.totalorder %s1405_s1, %s1405_s1 }
  0x1e   :  { %p1412_p0 = por %p1411_p13, %p1410_p12 }
  0x20   :  { %p1413_p1 = pnand %p1412_p0, %p1406_p11 }
  0x22   :  { %1416 = shalt.err (!%p1413_p1)
}
  0x23   :  { %20 = dma.hbm_to_vmem [thread:$0]  %s1633_s0, 64, %s18_s27, [#allocation3]  }
  0x24   :  { %s1417_s14 = scalar_lea.hbm %s1635_s2, 176 }
  0x25   :  { %p1418_p2 = scmp.ne.s32.totalorder %s1635_s2, %s1417_s14  ;;  %p1421_p3 = scmp.lt.u32.totalorder %s1417_s14, %s1635_s2 }
  0x27   :  { %p1423_p4 = pnand %p1421_p3, %p1418_p2 }
  0x29   :  { %1426 = shalt.err (!%p1423_p4)
}
  0x2a   :  { %s1427_s19 = scalar_lea.vmem %s39_s29, 176  ;;  %s1431_s20 = scalar_lea.vmem %s39_s29, 192 }
  0x2b   :  { %p1428_p5 = scmp.ne.s32.totalorder %s39_s29, %s1427_s19  ;;  %p1432_p6 = scmp.lt.s32.totalorder %s39_s29, %s39_s29 }
  0x2c   :  { %p1433_p7 = scmp.lt.s32.totalorder %s1431_s20, %s1427_s19 }
  0x2e   :  { %p1434_p8 = por %p1433_p7, %p1432_p6 }
  0x30   :  { %p1435_p9 = pnand %p1434_p8, %p1428_p5 }
  0x32   :  { %1438 = shalt.err (!%p1435_p9)
}
  0x33   :  { %s1472_s0 = smov 16   ;;  %s1473_s21 = smov 1  }
  0x34   :  { %44 = dma.hbm_to_vmem [thread:$0]  %s1635_s2, 176, %s39_s29, [#allocation6], %s1472_s0, %s1472_s0, %s1473_s21  }
  0x35   :  { %1461 = dma.done.wait [#allocation3], 64  }
  0x36   :  { %1462 = vsyncadd [#allocation3], 4294967232 }
  0x37   :  { %1463 = dma.done.wait [#allocation6], 7344  }
  0x38   :  { %1464 = vsyncadd [#allocation6], 4294959952  ;;  %v1474_v0 = vmov 0.0   ;;  %vm1475_vm0 = vmmov 0   ;;  %v1297_v1 = vld [vmem:[#allocation5] sm:$0xff]   ;;  %v1298_v2 = vld [vmem:[#allocation5 + $0x8] sm:$0xff]   ;;  %v55_v16 = vlaneseq }
  0x39   :  { %1147 = vmatprep.subr.bf16.mxu0 %v1474_v0  ;;  %1163 = vmatprep.mubr.msk.bf16.mxu0 %vm1475_vm0, %v1474_v0  ;;  %v1299_v3 = vld [vmem:[#allocation5 + $0x10] sm:$0xff]   ;;  %v1300_v4 = vld [vmem:[#allocation5 + $0x18] sm:$0xff]   ;;  %v1301_v5 = vld [vmem:[#allocation5 + $0x20] sm:$0xff]   ;;  %s1476_s2 = smov [#allocation8]  }
  0x3a   :  { %1167 = vmatprep.subr.bf16.mxu1 %v1474_v0  ;;  %1183 = vmatprep.mubr.msk.bf16.mxu1 %vm1475_vm0, %v1474_v0  ;;  %v1302_v6 = vld [vmem:[#allocation5 + $0x28] sm:$0xff]   ;;  %v1303_v7 = vld [vmem:[#allocation5 + $0x30] sm:$0xff]   ;;  %v1304_v8 = vld [vmem:[#allocation5 + $0x38] sm:$0xff]   ;;  %v56_v17 = vand.u32 127, %v55_v16  ;;  %s1006_s24 = sshll.u32 %s1476_s2, 4  ;;  %s1007_s24 = int_to_ptr.vmem [resolvable:$true] %s1006_s24 }
  0x3b   :  { %1148 = vmatpush3.bf16.msra.mxu0 %v1297_v1  ;;  %v60_v9 = vld [vmem:[#allocation2] sm:$0xf]  ;;  %v1017_v10 = vld [vmem:[#allocation7] ss:$0 sm:$0xff]  ;;  %v1306_v25 = vld [vmem:[#allocation5 + $0x48] sm:$0xff]   ;;  %s1439_s25 = scalar_lea.vmem %s1007_s24, 128  ;;  %p1444_p11 = scmp.lt.s32.totalorder %s1007_s24, %s1007_s24 }
  0x3c   :  { %1149 = vmatprep.subr.bf16.mxu0 %v1474_v0  ;;  %vm57_vm1 = vcmp.lt.s32.totalorder %v56_v17, 32  ;;  %v1305_v24 = vld [vmem:[#allocation5 + $0x40] sm:$0xff]   ;;  %v1307_v26 = vld [vmem:[#allocation5 + $0x50] sm:$0xff]   ;;  %v1308_v27 = vld [vmem:[#allocation5 + $0x58] sm:$0xff]   ;;  %p1440_p10 = scmp.ne.s32.totalorder %s1007_s24, %s1439_s25  ;;  %p1445_p12 = scmp.lt.s32.totalorder %s1439_s25, %s1439_s25 }
  0x3d   :  { %v1550_v21 = vsel %vm57_vm1, 1.0, %v1474_v0  ;;  %1168 = vmatpush3.bf16.msra.mxu1 %v1305_v24  ;;  %v1309_v28 = vld [vmem:[#allocation5 + $0x60] sm:$0xff]   ;;  %v1310_v29 = vld [vmem:[#allocation5 + $0x68] sm:$0xff]   ;;  %v1311_v30 = vld [vmem:[#allocation5 + $0x70] sm:$0xff]  }
  0x3e   :  { %1169 = vmatprep.subr.bf16.mxu1 %v1474_v0  ;;  %v1312_v31 = vld [vmem:[#allocation5 + $0x78] sm:$0xff]   ;;  %v1026_v40 = vld [vmem:[#allocation7 + $0x3] ss:$0 sm:$0xff]  ;;  %v1027_v43 = vld [vmem:[#allocation7 + $0x4] ss:$0 sm:$0xff]  ;;  %p1446_p13 = por %p1445_p12, %p1444_p11 }
  0x3f   :  { %1150 = vmatpush3.bf16.msra.mxu0 %v1298_v2  ;;  %v1313_v57 = vld [vmem:[#allocation5 + $0x80] sm:$0xff]   ;;  %v1314_v58 = vld [vmem:[#allocation5 + $0x88] sm:$0xff]   ;;  %v1315_v59 = vld [vmem:[#allocation5 + $0x90] sm:$0xff]  }
  0x40   :  { %1151 = vmatprep.subr.bf16.mxu0 %v1474_v0  ;;  %v1316_v60 = vld [vmem:[#allocation5 + $0x98] sm:$0xff]   ;;  %v1317_v61 = vld [vmem:[#allocation5 + $0xa0] sm:$0xff]   ;;  %v1318_v62 = vld [vmem:[#allocation5 + $0xa8] sm:$0xff]   ;;  %p1447_p0 = pnand %p1446_p13, %p1440_p10 }
  0x41   :  { %1170 = vmatpush3.bf16.msra.mxu1 %v1306_v25  ;;  %v1319_v63 = vld [vmem:[#allocation5 + $0xb0] sm:$0xff]   ;;  %v1320_v1 = vld [vmem:[#allocation5 + $0xb8] sm:$0xff]   ;;  %v1321_v2 = vld [vmem:[#allocation5 + $0xc0] sm:$0xff]  }
  0x42   :  { %1171 = vmatprep.subr.bf16.mxu1 %v1474_v0  ;;  %v1036_v17 = vld [vmem:[#allocation7 + $0x5] ss:$0 sm:$0xff]  ;;  %v1328_v25 = vld [vmem:[#allocation5 + $0xf8] sm:$0xff]  }
  0x43   :  { %1152 = vmatpush3.bf16.msra.mxu0 %v1299_v3  ;;  %v1322_v3 = vld [vmem:[#allocation5 + $0xc8] sm:$0xff]  }
  0x44   :  { %1153 = vmatprep.subr.bf16.mxu0 %v1474_v0 }
  0x45   :  { %1172 = vmatpush3.bf16.msra.mxu1 %v1307_v26 }
  0x46   :  { %1173 = vmatprep.subr.bf16.mxu1 %v1474_v0 }
  0x47   :  { %1154 = vmatpush3.bf16.msra.mxu0 %v1300_v4  ;;  %v1323_v4 = vld [vmem:[#allocation5 + $0xd0] sm:$0xff]  }
  0x48   :  { %1155 = vmatprep.subr.bf16.mxu0 %v1474_v0 }
  0x49   :  { %1174 = vmatpush3.bf16.msra.mxu1 %v1308_v27 }
  0x4a   :  { %1175 = vmatprep.subr.bf16.mxu1 %v1474_v0 }
  0x4b   :  { %1156 = vmatpush3.bf16.msra.mxu0 %v1301_v5  ;;  %v1324_v5 = vld [vmem:[#allocation5 + $0xd8] sm:$0xff]  }
  0x4c   :  { %1157 = vmatprep.subr.bf16.mxu0 %v1474_v0 }
  0x4d   :  { %1176 = vmatpush3.bf16.msra.mxu1 %v1309_v28 }
  0x4e   :  { %1177 = vmatprep.subr.bf16.mxu1 %v1474_v0 }
  0x4f   :  { %1158 = vmatpush3.bf16.msra.mxu0 %v1302_v6  ;;  %v1325_v6 = vld [vmem:[#allocation5 + $0xe0] sm:$0xff]  }
  0x50   :  { %1159 = vmatprep.subr.bf16.mxu0 %v1474_v0 }
  0x51   :  { %1178 = vmatpush3.bf16.msra.mxu1 %v1310_v29 }
  0x52   :  { %1179 = vmatprep.subr.bf16.mxu1 %v1474_v0 }
  0x53   :  { %1160 = vmatpush3.bf16.msra.mxu0 %v1303_v7  ;;  %v1326_v7 = vld [vmem:[#allocation5 + $0xe8] sm:$0xff]  }
  0x54   :  { %1161 = vmatprep.subr.bf16.mxu0 %v1474_v0 }
  0x55   :  { %1180 = vmatpush3.bf16.msra.mxu1 %v1311_v30 }
  0x56   :  { %1181 = vmatprep.subr.bf16.mxu1 %v1474_v0 }
  0x57   :  { %1162 = vmatpush3.bf16.msra.mxu0 %v1304_v8  ;;  %v1327_v8 = vld [vmem:[#allocation5 + $0xf0] sm:$0xff]  }
  0x58   :  { %1187 = vmatprep.subr.bf16.mxu0 %v1474_v0 }
  0x59   :  { %1182 = vmatpush3.bf16.msra.mxu1 %v1312_v31 }
  0x5a   :  { %1164 = vmatmul.mubr.bf16.vlgmr.msra.gmra.mrb[0].mxu0 %v60_v9  ;;  %1207 = vmatprep.subr.bf16.mxu1 %v1474_v0 }
  0x5b   :  { %1203 = vmatprep.mubr.msk.bf16.mxu0 %vm1475_vm0, %v1474_v0  ;;  %1188 = vmatpush3.bf16.msra.mxu0 %v1313_v57 }
  0x5c   :  { %1189 = vmatprep.subr.bf16.mxu0 %v1474_v0 }
  0x5f   :  { %1190 = vmatpush3.bf16.msra.mxu0 %v1314_v58  ;;  %v1054_v58 = vld [vmem:[#allocation7 + $0x7] ss:$0 sm:$0xff] }
  0x60   :  { %1191 = vmatprep.subr.bf16.mxu0 %v1474_v0 }
  0x63   :  { %1192 = vmatpush3.bf16.msra.mxu0 %v1315_v59 }
  0x64   :  { %1193 = vmatprep.subr.bf16.mxu0 %v1474_v0 }
  0x67   :  { %1194 = vmatpush3.bf16.msra.mxu0 %v1316_v60 }
  0x68   :  { %1195 = vmatprep.subr.bf16.mxu0 %v1474_v0 }
  0x6b   :  { %1196 = vmatpush3.bf16.msra.mxu0 %v1317_v61  ;;  %v1055_v61 = vld [vmem:[#allocation7 + $0x8] ss:$0 sm:$0xff] }
  0x6c   :  { %1197 = vmatprep.subr.bf16.mxu0 %v1474_v0 }
  0x6f   :  { %1198 = vmatpush3.bf16.msra.mxu0 %v1318_v62 }
  0x70   :  { %1199 = vmatprep.subr.bf16.mxu0 %v1474_v0 }
  0x73   :  { %1200 = vmatpush3.bf16.msra.mxu0 %v1319_v63 }
  0x74   :  { %1201 = vmatprep.subr.bf16.mxu0 %v1474_v0 }
  0x77   :  { %1202 = vmatpush3.bf16.msra.mxu0 %v1320_v1 }
  0x78   :  { %1227 = vmatprep.subr.bf16.mxu0 %v1474_v0 }
 0x12d   :  { %v166_v11 = vpop.f32.mrb[0].mxu0 }
 0x12e   :  { %v167_v12 = vadd.f32 %v1017_v10, %v166_v11  ;;  %v1165_v13 = vpop.f32.mrb[1].mxu0 }
 0x12f   :  { %v169_v14 = vpop.f32.mrb[2].mxu0 }
 0x130   :  { %176 = vadd.xlane.f32.xlu0 %v167_v12  ;;  %v1166_v15 = vpop.f32.mrb[3].mxu0 }
 0x1bd   :  { %v177_v18 = vpop.xlane.xlu0 %176 }
 0x1be   :  { %v178_v19 = vmul.f32 0.03125, %v177_v18 }
 0x1c0   :  { %v179_v20 = vsub.f32 %v167_v12, %v178_v19 }
 0x1c2   :  { %v180_v22 = vmul.f32 %v179_v20, %v179_v20  ;;  %v200_v41 = vmul.f32 %v1026_v40, %v179_v20  ;;  %v1037_v20 = vld [vmem:[#allocation7 + $0x6] ss:$0 sm:$0xff] }
 0x1c4   :  { %v181_v23 = vmul.f32 %v1550_v21, %v180_v22 }
 0x1c6   :  { %182 = vadd.xlane.f32.xlu0 %v181_v23 }
 0x253   :  { %v183_v32 = vpop.xlane.xlu0 %182 }
 0x254   :  { %v184_v33 = vmul.f32 0.032258064, %v183_v32 }
 0x256   :  { %1353 = vrsqrt.f32 %v184_v33  ;;  %vm187_vm2 = vcmp.eq.f32.partialorder %v184_v33, inf  ;;  %v190_v36 = vand.u32 2147483648, %v184_v33  ;;  %vm189_vm3 = vcmp.eq.f32.partialorder %v184_v33, 0.0 }
 0x260   :  { %v1354_v34 = vpop.eup %1353 }
 0x261   :  { %v186_v35 = vmul.f32 %v1354_v34, %v184_v33 }
 0x263   :  { %v188_v37 = vsel %vm187_vm2, %v184_v33, %v186_v35 }
 0x264   :  { %v191_v38 = vsel %vm189_vm3, %v190_v36, %v188_v37 }
 0x265   :  { %v192_v39 = vadd.f32 1e-06, %v191_v38 }
 0x267   :  { %1355 = vrcp.f32 %v192_v39 }
 0x271   :  { %v1356_v42 = vpop.eup %1355 }
 0x272   :  { %v201_v44 = vmul.f32 %v1356_v42, %v200_v41  ;;  %v1329_v42 = vld [vmem:[#allocation5 + $0x100] sm:$0xff]  }
 0x274   :  { %v208_v45 = vadd.f32 %v1027_v43, %v201_v44  ;;  %v1330_v43 = vld [vmem:[#allocation5 + $0x108] sm:$0xff]   ;;  %v1331_v44 = vld [vmem:[#allocation5 + $0x110] sm:$0xff]  }
 0x276   :  { %v226_v46 = vpack.c.bf16 %v208_v45, %v208_v45  ;;  %v1332_v45 = vld [vmem:[#allocation5 + $0x118] sm:$0xff]  }
 0x278   :  { %1184 = vmatmul.mubr.bf16.vlgmr.msra.gmra.mrb[0].mxu1 %v226_v46  ;;  %v1333_v46 = vld [vmem:[#allocation5 + $0x120] sm:$0xff]  }
 0x279   :  { %1223 = vmatprep.mubr.msk.bf16.mxu1 %vm1475_vm0, %v1474_v0  ;;  %1208 = vmatpush3.bf16.msra.mxu1 %v1321_v2 }
 0x27a   :  { %1209 = vmatprep.subr.bf16.mxu1 %v1474_v0 }
 0x27d   :  { %1210 = vmatpush3.bf16.msra.mxu1 %v1322_v3 }
 0x27e   :  { %1211 = vmatprep.subr.bf16.mxu1 %v1474_v0 }
 0x281   :  { %1212 = vmatpush3.bf16.msra.mxu1 %v1323_v4 }
 0x282   :  { %1213 = vmatprep.subr.bf16.mxu1 %v1474_v0 }
 0x285   :  { %1214 = vmatpush3.bf16.msra.mxu1 %v1324_v5 }
 0x286   :  { %1215 = vmatprep.subr.bf16.mxu1 %v1474_v0 }
 0x289   :  { %1216 = vmatpush3.bf16.msra.mxu1 %v1325_v6 }
 0x28a   :  { %1217 = vmatprep.subr.bf16.mxu1 %v1474_v0 }
 0x28d   :  { %1218 = vmatpush3.bf16.msra.mxu1 %v1326_v7 }
 0x28e   :  { %1219 = vmatprep.subr.bf16.mxu1 %v1474_v0 }
 0x291   :  { %1220 = vmatpush3.bf16.msra.mxu1 %v1327_v8 }
 0x292   :  { %1221 = vmatprep.subr.bf16.mxu1 %v1474_v0 }
 0x295   :  { %1222 = vmatpush3.bf16.msra.mxu1 %v1328_v25  ;;  %v1349_v25 = vld [vmem:[#allocation5 + $0x1a0] sm:$0xff]  }
 0x296   :  { %1247 = vmatprep.subr.bf16.mxu1 %v1474_v0 }
 0x34b   :  { %v309_v47 = vpop.f32.mrb[0].mxu1 }
 0x34c   :  { %v1563_v48 = vadd.f32 %v309_v47, %v167_v12  ;;  %v1185_v49 = vpop.f32.mrb[1].mxu1  ;;  %v1334_v47 = vld [vmem:[#allocation5 + $0x128] sm:$0xff]  }
 0x34d   :  { %v312_v50 = vpop.f32.mrb[2].mxu1  ;;  %v1336_v49 = vld [vmem:[#allocation5 + $0x138] sm:$0xff]  }
 0x34e   :  { %320 = vadd.xlane.f32.xlu1 %v1563_v48  ;;  %v1186_v51 = vpop.f32.mrb[3].mxu1 }
 0x3db   :  { %v321_v52 = vpop.xlane.xlu1 %320 }
 0x3dc   :  { %v322_v53 = vmul.f32 0.03125, %v321_v52 }
 0x3de   :  { %v323_v54 = vsub.f32 %v1563_v48, %v322_v53 }
 0x3e0   :  { %v324_v55 = vmul.f32 %v323_v54, %v323_v54  ;;  %v344_v18 = vmul.f32 %v1036_v17, %v323_v54  ;;  %v1342_v17 = vld [vmem:[#allocation5 + $0x168] sm:$0xff]  }
 0x3e2   :  { %v325_v56 = vmul.f32 %v1550_v21, %v324_v55 }
 0x3e4   :  { %326 = vadd.xlane.f32.xlu1 %v325_v56 }
 0x471   :  { %v327_v9 = vpop.xlane.xlu1 %326 }
 0x472   :  { %v328_v10 = vmul.f32 0.032258064, %v327_v9 }
 0x474   :  { %1357 = vrsqrt.f32 %v328_v10  ;;  %vm331_vm4 = vcmp.eq.f32.partialorder %v328_v10, inf  ;;  %v334_v13 = vand.u32 2147483648, %v328_v10  ;;  %vm333_vm5 = vcmp.eq.f32.partialorder %v328_v10, 0.0 }
 0x47e   :  { %v1358_v11 = vpop.eup %1357 }
 0x47f   :  { %v330_v12 = vmul.f32 %v1358_v11, %v328_v10 }
 0x481   :  { %v332_v14 = vsel %vm331_vm4, %v328_v10, %v330_v12  ;;  %v1337_v12 = vld [vmem:[#allocation5 + $0x140] sm:$0xff]  }
 0x482   :  { %v335_v15 = vsel %vm333_vm5, %v334_v13, %v332_v14  ;;  %v1338_v13 = vld [vmem:[#allocation5 + $0x148] sm:$0xff]   ;;  %v1339_v14 = vld [vmem:[#allocation5 + $0x150] sm:$0xff]  }
 0x483   :  { %v336_v16 = vadd.f32 1e-06, %v335_v15  ;;  %v1340_v15 = vld [vmem:[#allocation5 + $0x158] sm:$0xff]  }
 0x485   :  { %1359 = vrcp.f32 %v336_v16  ;;  %v1341_v16 = vld [vmem:[#allocation5 + $0x160] sm:$0xff]  }
 0x48f   :  { %v1360_v19 = vpop.eup %1359 }
 0x490   :  { %v345_v22 = vmul.f32 %v1360_v19, %v344_v18  ;;  %v1343_v18 = vld [vmem:[#allocation5 + $0x170] sm:$0xff]   ;;  %v1344_v19 = vld [vmem:[#allocation5 + $0x178] sm:$0xff]  }
 0x492   :  { %v352_v23 = vadd.f32 %v1037_v20, %v345_v22  ;;  %v1345_v20 = vld [vmem:[#allocation5 + $0x180] sm:$0xff]   ;;  %v1346_v22 = vld [vmem:[#allocation5 + $0x188] sm:$0xff]  }
 0x494   :  { %v370_v24 = vpack.c.bf16 %v352_v23, %v352_v23  ;;  %v1347_v23 = vld [vmem:[#allocation5 + $0x190] sm:$0xff]  }
 0x496   :  { %1204 = vmatmul.mubr.bf16.vlgmr.msra.gmra.mrb[4].mxu0 %v370_v24  ;;  %v1348_v24 = vld [vmem:[#allocation5 + $0x198] sm:$0xff]  }
 0x497   :  { %1243 = vmatprep.mubr.msk.bf16.mxu0 %vm1475_vm0, %v1474_v0  ;;  %1228 = vmatpush3.bf16.msra.mxu0 %v1329_v42 }
 0x498   :  { %1229 = vmatprep.subr.bf16.mxu0 %v1474_v0 }
 0x49b   :  { %1230 = vmatpush3.bf16.msra.mxu0 %v1330_v43 }
 0x49c   :  { %1231 = vmatprep.subr.bf16.mxu0 %v1474_v0 }
 0x49f   :  { %1232 = vmatpush3.bf16.msra.mxu0 %v1331_v44 }
 0x4a0   :  { %1233 = vmatprep.subr.bf16.mxu0 %v1474_v0 }
 0x4a3   :  { %1234 = vmatpush3.bf16.msra.mxu0 %v1332_v45 }
 0x4a4   :  { %1235 = vmatprep.subr.bf16.mxu0 %v1474_v0 }
 0x4a7   :  { %1236 = vmatpush3.bf16.msra.mxu0 %v1333_v46 }
 0x4a8   :  { %1237 = vmatprep.subr.bf16.mxu0 %v1474_v0 }
 0x4ab   :  { %1238 = vmatpush3.bf16.msra.mxu0 %v1334_v47 }
 0x4ac   :  { %1239 = vmatprep.subr.bf16.mxu0 %v1474_v0 }
 0x569   :  { %v453_v26 = vpop.f32.mrb[4].mxu0 }
 0x56a   :  { %v459_v27 = vmax.f32 %v453_v26, 0.0  ;;  %v1205_v28 = vpop.f32.mrb[5].mxu0  ;;  %v1350_v26 = vld [vmem:[#allocation5 + $0x1a8] sm:$0xff]  }
 0x56b   :  { %v456_v29 = vpop.f32.mrb[6].mxu0 }
 0x56c   :  { %v477_v30 = vpack.c.bf16 %v459_v27, %v459_v27  ;;  %v1206_v31 = vpop.f32.mrb[7].mxu0  ;;  %v1351_v27 = vld [vmem:[#allocation5 + $0x1b0] sm:$0xff]  }
 0x56e   :  { %1224 = vmatmul.mubr.bf16.vlgmr.msra.gmra.mrb[4].mxu1 %v477_v30 }
 0x56f   :  { %1263 = vmatprep.mubr.msk.bf16.mxu1 %vm1475_vm0, %v1474_v0  ;;  %1248 = vmatpush3.bf16.msra.mxu1 %v1337_v12 }
 0x570   :  { %1249 = vmatprep.subr.bf16.mxu1 %v1474_v0 }
 0x573   :  { %1250 = vmatpush3.bf16.msra.mxu1 %v1338_v13 }
 0x574   :  { %1251 = vmatprep.subr.bf16.mxu1 %v1474_v0 }
 0x577   :  { %1252 = vmatpush3.bf16.msra.mxu1 %v1339_v14 }
 0x578   :  { %1253 = vmatprep.subr.bf16.mxu1 %v1474_v0 }
 0x57b   :  { %1254 = vmatpush3.bf16.msra.mxu1 %v1340_v15 }
 0x57c   :  { %1255 = vmatprep.subr.bf16.mxu1 %v1474_v0 }
 0x57f   :  { %1256 = vmatpush3.bf16.msra.mxu1 %v1341_v16 }
 0x580   :  { %1257 = vmatprep.subr.bf16.mxu1 %v1474_v0 }
 0x583   :  { %1258 = vmatpush3.bf16.msra.mxu1 %v1342_v17 }
 0x584   :  { %1259 = vmatprep.subr.bf16.mxu1 %v1474_v0 }
 0x587   :  { %1260 = vmatpush3.bf16.msra.mxu1 %v1343_v18 }
 0x588   :  { %1261 = vmatprep.subr.bf16.mxu1 %v1474_v0 }
 0x58b   :  { %1262 = vmatpush3.bf16.msra.mxu1 %v1344_v19 }
 0x641   :  { %v560_v32 = vpop.f32.mrb[4].mxu1 }
 0x642   :  { %v566_v33 = vadd.f32 %v560_v32, %v1563_v48  ;;  %v1225_v34 = vpop.f32.mrb[5].mxu1  ;;  %v1335_v48 = vld [vmem:[#allocation5 + $0x130] sm:$0xff]  }
 0x643   :  { %v563_v35 = vpop.f32.mrb[6].mxu1  ;;  %1240 = vmatpush3.bf16.msra.mxu0 %v1335_v48 }
 0x644   :  { %571 = vadd.xlane.f32.xlu0 %v566_v33  ;;  %v1226_v36 = vpop.f32.mrb[7].mxu1  ;;  %1241 = vmatprep.subr.bf16.mxu0 %v1474_v0 }
 0x645   :  { %v1064_v36 = vld [vmem:[#allocation7 + $0x9] ss:$0 sm:$0xff] }
 0x647   :  { %1242 = vmatpush3.bf16.msra.mxu0 %v1336_v49 }
 0x648   :  { %1267 = vmatprep.subr.bf16.mxu0 %v1474_v0 }
 0x6d1   :  { %v572_v37 = vpop.xlane.xlu0 %571 }
 0x6d2   :  { %v573_v38 = vmul.f32 0.03125, %v572_v37 }
 0x6d4   :  { %v574_v39 = vsub.f32 %v566_v33, %v573_v38 }
 0x6d6   :  { %v575_v40 = vmul.f32 %v574_v39, %v574_v39  ;;  %v595_v59 = vmul.f32 %v1054_v58, %v574_v39  ;;  %v1065_v39 = vld [vmem:[#allocation7 + $0xa] ss:$0 sm:$0xff] }
 0x6d8   :  { %v576_v41 = vmul.f32 %v1550_v21, %v575_v40 }
 0x6da   :  { %577 = vadd.xlane.f32.xlu1 %v576_v41 }
 0x767   :  { %v578_v50 = vpop.xlane.xlu1 %577 }
 0x768   :  { %v579_v51 = vmul.f32 0.032258064, %v578_v50 }
 0x76a   :  { %1361 = vrsqrt.f32 %v579_v51  ;;  %vm582_vm6 = vcmp.eq.f32.partialorder %v579_v51, inf  ;;  %v585_v54 = vand.u32 2147483648, %v579_v51  ;;  %vm584_vm7 = vcmp.eq.f32.partialorder %v579_v51, 0.0 }
 0x774   :  { %v1362_v52 = vpop.eup %1361 }
 0x775   :  { %v581_v53 = vmul.f32 %v1362_v52, %v579_v51 }
 0x777   :  { %v583_v55 = vsel %vm582_vm6, %v579_v51, %v581_v53 }
 0x778   :  { %v586_v56 = vsel %vm584_vm7, %v585_v54, %v583_v55 }
 0x779   :  { %v587_v57 = vadd.f32 1e-06, %v586_v56 }
 0x77b   :  { %1363 = vrcp.f32 %v587_v57 }
 0x785   :  { %v1364_v60 = vpop.eup %1363 }
 0x786   :  { %v596_v62 = vmul.f32 %v1364_v60, %v595_v59 }
 0x788   :  { %v603_v63 = vadd.f32 %v1055_v61, %v596_v62 }
 0x78a   :  { %v621_v1 = vpack.c.bf16 %v603_v63, %v603_v63 }
 0x78c   :  { %1244 = vmatmul.mubr.bf16.vlgmr.msra.gmra.mrb[8].mxu0 %v621_v1 }
 0x78d   :  { %1283 = vmatprep.mubr.msk.bf16.mxu0 %vm1475_vm0, %v1474_v0  ;;  %1268 = vmatpush3.bf16.msra.mxu0 %v1345_v20 }
 0x78e   :  { %1269 = vmatprep.subr.bf16.mxu0 %v1474_v0 }
 0x791   :  { %1270 = vmatpush3.bf16.msra.mxu0 %v1346_v22 }
 0x792   :  { %1271 = vmatprep.subr.bf16.mxu0 %v1474_v0 }
 0x795   :  { %1272 = vmatpush3.bf16.msra.mxu0 %v1347_v23 }
 0x796   :  { %1273 = vmatprep.subr.bf16.mxu0 %v1474_v0 }
 0x799   :  { %1274 = vmatpush3.bf16.msra.mxu0 %v1348_v24 }
 0x79a   :  { %1275 = vmatprep.subr.bf16.mxu0 %v1474_v0 }
 0x79d   :  { %1276 = vmatpush3.bf16.msra.mxu0 %v1349_v25 }
 0x79e   :  { %1277 = vmatprep.subr.bf16.mxu0 %v1474_v0 }
 0x7a1   :  { %1278 = vmatpush3.bf16.msra.mxu0 %v1350_v26 }
 0x7a2   :  { %1279 = vmatprep.subr.bf16.mxu0 %v1474_v0 }
 0x7a5   :  { %1280 = vmatpush3.bf16.msra.mxu0 %v1351_v27 }
 0x7a6   :  { %1281 = vmatprep.subr.bf16.mxu0 %v1474_v0  ;;  %v1352_v0 = vld [vmem:[#allocation5 + $0x1b8] sm:$0xff]  }
 0x7a9   :  { %1282 = vmatpush3.bf16.msra.mxu0 %v1352_v0 }
 0x85f   :  { %v704_v2 = vpop.f32.mrb[8].mxu0 }
 0x860   :  { %v1600_v3 = vadd.f32 %v704_v2, %v566_v33  ;;  %v1245_v4 = vpop.f32.mrb[9].mxu0 }
 0x861   :  { %v707_v5 = vpop.f32.mrb[10].mxu0  ;;  %v1082_v4 = vld [vmem:[#allocation7 + $0x1] ss:$0 sm:$0xff] }
 0x862   :  { %715 = vadd.xlane.f32.xlu0 %v1600_v3  ;;  %v1246_v6 = vpop.f32.mrb[11].mxu0 }
 0x8ef   :  { %v716_v7 = vpop.xlane.xlu0 %715 }
 0x8f0   :  { %v717_v8 = vmul.f32 0.03125, %v716_v7  ;;  %v1083_v7 = vld [vmem:[#allocation7 + $0x2] ss:$0 sm:$0xff] }
 0x8f2   :  { %v718_v9 = vsub.f32 %v1600_v3, %v717_v8 }
 0x8f4   :  { %v719_v10 = vmul.f32 %v718_v9, %v718_v9  ;;  %v739_v37 = vmul.f32 %v1064_v36, %v718_v9 }
 0x8f6   :  { %v720_v11 = vmul.f32 %v1550_v21, %v719_v10 }
 0x8f8   :  { %721 = vadd.xlane.f32.xlu1 %v720_v11 }
 0x985   :  { %v722_v28 = vpop.xlane.xlu1 %721 }
 0x986   :  { %v723_v29 = vmul.f32 0.032258064, %v722_v28 }
 0x988   :  { %1365 = vrsqrt.f32 %v723_v29  ;;  %vm726_vm8 = vcmp.eq.f32.partialorder %v723_v29, inf  ;;  %v729_v32 = vand.u32 2147483648, %v723_v29  ;;  %vm728_vm9 = vcmp.eq.f32.partialorder %v723_v29, 0.0 }
 0x992   :  { %v1366_v30 = vpop.eup %1365 }
 0x993   :  { %v725_v31 = vmul.f32 %v1366_v30, %v723_v29 }
 0x995   :  { %v727_v33 = vsel %vm726_vm8, %v723_v29, %v725_v31 }
 0x996   :  { %v730_v34 = vsel %vm728_vm9, %v729_v32, %v727_v33 }
 0x997   :  { %v731_v35 = vadd.f32 1e-06, %v730_v34 }
 0x999   :  { %1367 = vrcp.f32 %v731_v35 }
 0x9a3   :  { %v1368_v38 = vpop.eup %1367 }
 0x9a4   :  { %v740_v40 = vmul.f32 %v1368_v38, %v739_v37 }
 0x9a6   :  { %v747_v41 = vadd.f32 %v1065_v39, %v740_v40 }
 0x9a8   :  { %v765_v42 = vpack.c.bf16 %v747_v41, %v747_v41 }
 0x9aa   :  { %1264 = vmatmul.mubr.bf16.vlgmr.msra.gmra.mrb[8].mxu1 %v765_v42 }
 0xa7d   :  { %v848_v43 = vpop.f32.mrb[8].mxu1 }
 0xa7e   :  { %v854_v44 = vmax.f32 %v848_v43, 0.0  ;;  %v1265_v45 = vpop.f32.mrb[9].mxu1 }
 0xa7f   :  { %v851_v46 = vpop.f32.mrb[10].mxu1 }
 0xa80   :  { %v872_v47 = vpack.c.bf16 %v854_v44, %v854_v44  ;;  %v1266_v48 = vpop.f32.mrb[11].mxu1 }
 0xa82   :  { %1284 = vmatmul.mubr.bf16.vlgmr.msra.gmra.mrb[12].mxu0 %v872_v47 }
 0xb55   :  { %v955_v49 = vpop.f32.mrb[12].mxu0 }
 0xb56   :  { %v961_v50 = vadd.f32 %v955_v49, %v1600_v3  ;;  %v1285_v51 = vpop.f32.mrb[13].mxu0 }
 0xb57   :  { %v958_v52 = vpop.f32.mrb[14].mxu0 }
 0xb58   :  { %966 = vadd.xlane.f32.xlu0 %v961_v50  ;;  %v1286_v53 = vpop.f32.mrb[15].mxu0 }
 0xbe5   :  { %v967_v54 = vpop.xlane.xlu0 %966 }
 0xbe6   :  { %v968_v55 = vmul.f32 0.03125, %v967_v54 }
 0xbe8   :  { %v969_v56 = vsub.f32 %v961_v50, %v968_v55 }
 0xbea   :  { %v970_v57 = vmul.f32 %v969_v56, %v969_v56  ;;  %v990_v5 = vmul.f32 %v1082_v4, %v969_v56 }
 0xbec   :  { %v971_v58 = vmul.f32 %v1550_v21, %v970_v57 }
 0xbee   :  { %972 = vadd.xlane.f32.xlu1 %v971_v58 }
 0xc7b   :  { %v973_v59 = vpop.xlane.xlu1 %972 }
 0xc7c   :  { %v974_v60 = vmul.f32 0.032258064, %v973_v59 }
 0xc7e   :  { %1369 = vrsqrt.f32 %v974_v60  ;;  %vm977_vm10 = vcmp.eq.f32.partialorder %v974_v60, inf  ;;  %v980_v63 = vand.u32 2147483648, %v974_v60  ;;  %vm979_vm11 = vcmp.eq.f32.partialorder %v974_v60, 0.0 }
 0xc88   :  { %v1370_v61 = vpop.eup %1369 }
 0xc89   :  { %v976_v62 = vmul.f32 %v1370_v61, %v974_v60 }
 0xc8b   :  { %v978_v1 = vsel %vm977_vm10, %v974_v60, %v976_v62 }
 0xc8c   :  { %v981_v2 = vsel %vm979_vm11, %v980_v63, %v978_v1 }
 0xc8d   :  { %v982_v3 = vadd.f32 1e-06, %v981_v2 }
 0xc8f   :  { %1371 = vrcp.f32 %v982_v3 }
 0xc99   :  { %v1372_v6 = vpop.eup %1371 }
 0xc9a   :  { %v991_v21 = vmul.f32 %v1372_v6, %v990_v5 }
 0xc9c   :  { %v998_v8 = vadd.f32 %v1083_v7, %v991_v21 }
 0xc9e   :  { %999 = vst [vmem:[#allocation8] sm:$0xff] %v998_v8 }
 0xc9f   :  { %1450 = shalt.err (!%p1447_p0)
}
 0xca0   :  { %s1451_s28 = scalar_lea.hbm %s1636_s3, 128 }
 0xca1   :  { %p1452_p1 = scmp.ne.s32.totalorder %s1636_s3, %s1451_s28  ;;  %p1455_p2 = scmp.lt.u32.totalorder %s1451_s28, %s1636_s3 }
 0xca3   :  { %p1457_p3 = pnand %p1455_p2, %p1452_p1 }
 0xca5   :  { %1460 = shalt.err (!%p1457_p3)
}
 0xca6   :  { %1009 = dma.vmem_to_hbm [thread:$0]  %s1007_s24, 128, %s1636_s3, [#allocation4]  }
 0xca7   :  { %1465 = dma.done.wait [#allocation4], 128  }
 0xca8   :  { %1466 = vsyncadd [#allocation4], 4294967168 }
 0xca9   :  { %1013 = vsyncpa [#allocation3], 1 }
 0xcaa   :  { %1014 = vsyncpa [#allocation6], 1 }
 0xcab   :  { %1015 = vsyncpa [#allocation4], 1 }

</bundles_post_ra>
